<compile_context>
chip_gen: v7x
topology: tpu7x:2x2x1
jax: 0.10.0
libtpu: 0.0.40
codegen_flags: <defaults>
</compile_context>

<pallas_src>
import jax
import jax.numpy as jnp
from jax.experimental import pallas as pl
from jax.experimental.pallas import tpu as pltpu


def _disc_mi_kernel(x_ref, y_ref, w_in_ref, b_in_ref, w_out_ref, out_ref):
    x = x_ref[...]                        # (B, D1)
    y = y_ref[...]                        # (B, D2)
    b, d1 = x.shape

    wx = w_in_ref[:d1, :]                 # (D1, H)  static slice: free
    wy = w_in_ref[d1:, :]                 # (D2, H)
    b_in = b_in_ref[...]                  # (1, H)
    w_out = w_out_ref[...]                # (1, H)

    # concat(x, y) @ W_in == x @ Wx + y @ Wy   (two small MXU ops; the split
    # is kept on purpose -- it is what enables the roll trick below).
    xwx = jnp.dot(x, wx, preferred_element_type=jnp.float32)   # (B, H)
    ywy = jnp.dot(y, wy, preferred_element_type=jnp.float32)   # (B, H)

    # shuffle(y)[i] = y[(i+1) % B]  =>  (sy @ Wy)[i] = (y @ Wy)[(i+1) % B].
    # Roll the product instead of projecting y a second time: XLU sublane
    # rotate; shift = B-1 is exactly jnp.roll(ywy, -1, axis=0).
    ywy_sh = pltpu.roll(ywy, shift=b - 1, axis=0)

    base = xwx + b_in                     # shared: one add + one b_in broadcast
    pre_j = base + ywy
    pre_m = base + ywy_sh
    h_j = jnp.where(pre_j >= 0, pre_j, 0.01 * pre_j)   # leaky_relu, slope 0.01
    h_m = jnp.where(pre_m >= 0, pre_m, 0.01 * pre_m)

    # b_out cancels exactly in mean(s_joint) - mean(s_marg); fuse both score
    # reductions into one 2-D reduction and write the scalar straight to SMEM.
    delta = (h_j - h_m) * w_out                        # (B, H)
    out_ref[0, 0] = (0.01 / b) * jnp.sum(delta)


def disc_mi_loss(x, y, w_in, b_in, w_out, b_out=None):
    """Fused Pallas forward; returns the scalar MI-discriminator loss.

    `b_out` is accepted for interface parity with the module but cancels
    exactly inside the loss difference, so it is never sent to the kernel.
    """
    del b_out
    B, D1 = x.shape
    _, D2 = y.shape
    H = w_in.shape[1]
    assert w_in.shape == (D1 + D2, H)
    # pltpu.roll on the batch axis rotates sublanes; require no padding rows
    # so padding can never rotate into the batch.
    assert B % 8 == 0, "batch must be a multiple of 8 (f32 sublane count)"

    vmem = pl.BlockSpec(memory_space=pltpu.MemorySpace.VMEM)
    smem = pl.BlockSpec(memory_space=pltpu.MemorySpace.SMEM)

    bytes_in = 4 * (x.size + y.size + w_in.size + b_in.size + w_out.size)
    cost = pl.CostEstimate(
        flops=2 * B * (D1 + D2) * H + 8 * B * H,   # two dots + elementwise
        transcendentals=0,
        bytes_accessed=bytes_in + 4,
    )

    out = pl.pallas_call(
        _disc_mi_kernel,
        out_shape=jax.ShapeDtypeStruct((1, 1), jnp.float32),
        in_specs=[vmem, vmem, vmem, vmem, vmem],
        out_specs=smem,
        cost_estimate=cost,
    )(x, y, w_in, b_in.reshape(1, H), w_out.reshape(1, H))
    return out[0, 0]


def _reference(x, y, w_in, b_in, w_out, b_out):
    """Pure-JAX reference mirroring the PyTorch module (eval mode)."""
    def score(xx, yy):
        h = jnp.dot(jnp.concatenate([xx, yy], axis=-1), w_in) + b_in
        h = jnp.where(h >= 0, h, 0.01 * h)
        return jnp.dot(h, w_out.T)[:, 0] + b_out[0, 0]

    sy = jnp.roll(y, -1, axis=0)
    return 0.01 * (jnp.mean(score(x, y)) - jnp.mean(score(x, sy)))


if __name__ == "__main__":
    # Small shapes consistent with the module: x_dim = y_dim = hidden = 32.
    B, D1, D2 = 8, 32, 32
    H = D2  # MLP hidden size == y_dim in Disc

    key = jax.random.PRNGKey(0)
    kx, ky, k1, k2, k3, k4 = jax.random.split(key, 6)

    x = jax.random.normal(kx, (B, D1), dtype=jnp.float32)
    y = jax.random.normal(ky, (B, D2), dtype=jnp.float32)

    # Deterministic parameter init (mimicking nn.Linear's uniform fan-in init)
    lim_in = (D1 + D2) ** -0.5
    lim_out = H ** -0.5
    w_in = jax.random.uniform(k1, (D1 + D2, H), jnp.float32, -lim_in, lim_in)
    b_in = jax.random.uniform(k2, (1, H), jnp.float32, -lim_in, lim_in)
    w_out = jax.random.uniform(k3, (1, H), jnp.float32, -lim_out, lim_out)
    b_out = jax.random.uniform(k4, (1, 1), jnp.float32, -lim_out, lim_out)

    loss = disc_mi_loss(x, y, w_in, b_in, w_out, b_out)
    jax.block_until_ready(loss)

    ref = _reference(x, y, w_in, b_in, w_out, b_out)
    assert jnp.allclose(loss, ref, atol=1e-5, rtol=1e-5), (loss, ref)

    print("KERNEL_OK")
</pallas_src>

<mosaic_0001>
module attributes {stable_mosaic.version = 11 : i64} {
  func.func @_disc_mi_kernel(%arg0: memref<8x32xf32, #tpu.memory_space<vmem>>, %arg1: memref<8x32xf32, #tpu.memory_space<vmem>>, %arg2: memref<64x32xf32, #tpu.memory_space<vmem>>, %arg3: memref<1x32xf32, #tpu.memory_space<vmem>>, %arg4: memref<1x32xf32, #tpu.memory_space<vmem>>, %arg5: memref<1x1xf32, #tpu.memory_space<smem>>) attributes {dimension_semantics = [], scalar_prefetch = 0 : i64, scratch_operands = 0 : i64, tpu.core_type = #tpu.core_type<tc>} {
    %c0 = arith.constant 0 : index
    %c0_0 = arith.constant 0 : index
    %0 = vector.load %arg0[%c0, %c0_0] : memref<8x32xf32, #tpu.memory_space<vmem>>, vector<8x32xf32>
    %c0_1 = arith.constant 0 : index
    %c0_2 = arith.constant 0 : index
    %1 = vector.load %arg1[%c0_1, %c0_2] : memref<8x32xf32, #tpu.memory_space<vmem>>, vector<8x32xf32>
    %c0_3 = arith.constant 0 : index
    %c0_4 = arith.constant 0 : index
    %2 = vector.load %arg2[%c0_3, %c0_4] : memref<64x32xf32, #tpu.memory_space<vmem>>, vector<32x32xf32>
    %c32 = arith.constant 32 : index
    %c0_5 = arith.constant 0 : index
    %3 = vector.load %arg2[%c32, %c0_5] : memref<64x32xf32, #tpu.memory_space<vmem>>, vector<32x32xf32>
    %c0_6 = arith.constant 0 : index
    %c0_7 = arith.constant 0 : index
    %4 = vector.load %arg3[%c0_6, %c0_7] : memref<1x32xf32, #tpu.memory_space<vmem>>, vector<1x32xf32>
    %c0_8 = arith.constant 0 : index
    %c0_9 = arith.constant 0 : index
    %5 = vector.load %arg4[%c0_8, %c0_9] : memref<1x32xf32, #tpu.memory_space<vmem>>, vector<1x32xf32>
    %cst = arith.constant dense<0.000000e+00> : vector<8x32xf32>
    %6 = tpu.matmul %0, %2, %cst {dimension_numbers = #tpu.dot_dimension_numbers<[1], [0], [0], [1], [0, 0, 1, 1], [], []>} : vector<8x32xf32>, vector<32x32xf32>, vector<8x32xf32> -> vector<8x32xf32>
    %cst_10 = arith.constant dense<0.000000e+00> : vector<8x32xf32>
    %7 = tpu.matmul %1, %3, %cst_10 {dimension_numbers = #tpu.dot_dimension_numbers<[1], [0], [0], [1], [0, 0, 1, 1], [], []>} : vector<8x32xf32>, vector<32x32xf32>, vector<8x32xf32> -> vector<8x32xf32>
    %c7_i32 = arith.constant 7 : i32
    %8 = tpu.dynamic_rotate %7 by %c7_i32 dim 0 : vector<8x32xf32>, i32 -> vector<8x32xf32>
    %9 = vector.broadcast %4 : vector<1x32xf32> to vector<8x32xf32>
    %10 = arith.addf %6, %9 : vector<8x32xf32>
    %11 = arith.addf %10, %7 : vector<8x32xf32>
    %12 = arith.addf %10, %8 : vector<8x32xf32>
    %cst_11 = arith.constant 0.000000e+00 : f32
    %13 = vector.broadcast %cst_11 : f32 to vector<8x32xf32>
    %14 = arith.cmpf oge, %11, %13 : vector<8x32xf32>
    %cst_12 = arith.constant 0.00999999977 : f32
    %15 = vector.broadcast %cst_12 : f32 to vector<8x32xf32>
    %16 = arith.mulf %15, %11 : vector<8x32xf32>
    %17 = arith.select %14, %11, %16 : vector<8x32xi1>, vector<8x32xf32>
    %cst_13 = arith.constant 0.000000e+00 : f32
    %18 = vector.broadcast %cst_13 : f32 to vector<8x32xf32>
    %19 = arith.cmpf oge, %12, %18 : vector<8x32xf32>
    %cst_14 = arith.constant 0.00999999977 : f32
    %20 = vector.broadcast %cst_14 : f32 to vector<8x32xf32>
    %21 = arith.mulf %20, %12 : vector<8x32xf32>
    %22 = arith.select %19, %12, %21 : vector<8x32xi1>, vector<8x32xf32>
    %23 = arith.subf %17, %22 : vector<8x32xf32>
    %24 = vector.broadcast %5 : vector<1x32xf32> to vector<8x32xf32>
    %25 = arith.mulf %23, %24 : vector<8x32xf32>
    %26 = vector.shape_cast %25 : vector<8x32xf32> to vector<1x8x32xf32>
    %cst_15 = arith.constant dense<0.000000e+00> : vector<1xf32>
    %27 = vector.multi_reduction <add>, %26, %cst_15 [1, 2] : vector<1x8x32xf32> to vector<1xf32>
    %28 = vector.shape_cast %27 : vector<1xf32> to vector<1x1x1xf32>
    %29 = vector.extract %28[0, 0, 0] : f32 from vector<1x1x1xf32>
    %cst_16 = arith.constant 1.250000e-03 : f32
    %30 = arith.mulf %cst_16, %29 : f32
    %c0_17 = arith.constant 0 : index
    %c0_18 = arith.constant 0 : index
    %31 = memref.load %arg5[%c0_17, %c0_18] : memref<1x1xf32, #tpu.memory_space<smem>>
    memref.store %30, %arg5[%c0_17, %c0_18] : memref<1x1xf32, #tpu.memory_space<smem>>
    return
  }
}

</mosaic_0001>

<bundles_post_ra>
// kernel: tpu_custom_call.1
= control target key start
LH: loop header
LB: loop body
LE: loop exit
PB: predicated region body
PF: predicated region fallthrough
CT: control target
= control target key end

     0   :  { %v295_v3 = vmov 0.0|0.0   ;;  %vm296_vm0 = vmmov 0   ;;  %v297_v11 = vmov 0.0   ;;  %s380_s0 = inlined_call_operand.vmem [shape: f32[8,32], index: 0, kind: input, shape index: {}]   ;;  %s381_s1 = inlined_call_operand.vmem [shape: f32[8,32], index: 1, kind: input, shape index: {}]   ;;  %s382_s2 = inlined_call_operand.vmem [shape: f32[64,32], index: 2, kind: input, shape index: {}]   ;;  %s383_s3 = inlined_call_operand.vmem [shape: f32[1,32], index: 3, kind: input, shape index: {}]   ;;  %s384_s4 = inlined_call_operand.vmem [shape: f32[1,32], index: 4, kind: input, shape index: {}]   ;;  %s385_s5 = inlined_call_operand.hbm [shape: f32[1,1], index: 5, kind: output, shape index: {}]  }
   0x1   :  { %v27_v0 = vld [vmem:[%s382_s2 + $0x20] sm:$0xff]  ;;  %v28_v1 = vld [vmem:[%s382_s2 + $0x28] sm:$0xff]  ;;  %265 = vmatprep.subr.bf16.mxu0 %v295_v3  ;;  %271 = vmatprep.subr.bf16.mxu1 %v295_v3  ;;  %v29_v6 = vld [vmem:[%s382_s2 + $0x30] sm:$0xff] }
   0x2   :  { %v23_v2 = vld [vmem:[%s382_s2] sm:$0xff]  ;;  %v266_v4 = vpack.c.bf16 %v28_v1, %v27_v0  ;;  %v24_v5 = vld [vmem:[%s382_s2 + $0x8] sm:$0xff]  ;;  %v30_v7 = vld [vmem:[%s382_s2 + $0x38] sm:$0xff]  ;;  %251 = vmatprep.mubr.msk.f32.mxu0 %vm296_vm0, %v297_v11  ;;  %262 = vmatprep.mubr.msk.f32.mxu1 %vm296_vm0, %v297_v11 }
   0x3   :  { %v272_v8 = vpack.c.bf16 %v24_v5, %v23_v2  ;;  %v25_v9 = vld [vmem:[%s382_s2 + $0x10] sm:$0xff]  ;;  %v26_v10 = vld [vmem:[%s382_s2 + $0x18] sm:$0xff]  ;;  %v269_v12 = vpack.c.bf16 %v30_v7, %v29_v6 }
   0x4   :  { %267 = vmatpush3.bf16.msra.mxu0 %v266_v4 }
   0x5   :  { %10 = vsyncpa [#allocation3], 0  ;;  %273 = vmatpush3.bf16.msra.mxu1 %v272_v8  ;;  %268 = vmatprep.subr.bf16.mxu0 %v295_v3  ;;  %v275_v13 = vpack.c.bf16 %v26_v10, %v25_v9  ;;  %v22_v14 = vld [vmem:[%s381_s1] sm:$0xff]  ;;  %vm33_vm1 = vcmask 261120   ;;  %s283_s16 = scalar_lea.hbm %s385_s5, 16 }
   0x6   :  { %274 = vmatprep.subr.bf16.mxu1 %v295_v3  ;;  %v21_v15 = vld [vmem:[%s380_s0] sm:$0xff]  ;;  %p284_p0 = scmp.ne.s32.totalorder %s385_s5, %s283_s16  ;;  %p287_p1 = scmp.lt.u32.totalorder %s283_s16, %s385_s5 }
   0x7   :  { %v230_v16 = vld [vmem:[%s383_s3] ss:$0 sm:$0xff] }
   0x8   :  { %270 = vmatpush3.bf16.msra.mxu0 %v269_v12  ;;  %v232_v27 = vld [vmem:[%s384_s4] ss:$0 sm:$0xff]  ;;  %p289_p2 = pnand %p287_p1, %p284_p0 }
   0x9   :  { %276 = vmatpush3.bf16.msra.mxu1 %v275_v13 }
   0xb   :  { %252 = vmatmul.mubr.msk.f32.vlgmr.msra.gmra.mrb[0].mxu0 %vm33_vm1, %v22_v14 }
   0xc   :  { %263 = vmatmul.mubr.msk.f32.vlgmr.msra.gmra.mrb[0].mxu1 %vm33_vm1, %v21_v15 }
  0xde   :  { %v103_v17 = vpop.f32.mrb[0].mxu0 }
  0xdf   :  { %v107_v18 = vrot.slane %v103_v17, 1  ;;  %v183_v19 = vpop.f32.mrb[0].mxu1  ;;  %v253_v20 = vpop.f32.mrb[1].mxu0 }
  0xe0   :  { %v184_v21 = vadd.f32 %v230_v16, %v183_v19  ;;  %v264_v22 = vpop.f32.mrb[1].mxu1 }
  0xe2   :  { %v187_v23 = vadd.f32 %v184_v21, %v103_v17  ;;  %v188_v24 = vadd.f32 %v184_v21, %v107_v18 }
  0xe4   :  { %v190_v25 = vmul.f32 0.01, %v187_v23  ;;  %v193_v26 = vmul.f32 0.01, %v188_v24  ;;  %vm189_vm2 = vcmp.ge.f32.partialorder %v187_v23, 0.0  ;;  %vm192_vm3 = vcmp.ge.f32.partialorder %v188_v24, 0.0 }
  0xe6   :  { %v191_v28 = vsel %vm189_vm2, %v187_v23, %v190_v25  ;;  %v194_v29 = vsel %vm192_vm3, %v188_v24, %v193_v26 }
  0xe7   :  { %v195_v30 = vsub.f32 %v191_v28, %v194_v29 }
  0xe9   :  { %v202_v31 = vmul.f32 %v232_v27, %v195_v30 }
  0xeb   :  { %v203_v32 = vsel %vm33_vm1, %v202_v31, 0.0 }
  0xec   :  { %204 = vadd.xlane.f32.xlu0 %v203_v32 }
 0x179   :  { %v205_v33 = vpop.xlane.xlu0 %204 }
 0x17a   :  { %v206_v34 = vrot.slane %v205_v33, 4 }
 0x17c   :  { %v207_v35 = vadd.f32 %v206_v34, %v205_v33 }
 0x17e   :  { %v208_v36 = vrot.slane %v207_v35, 2 }
 0x180   :  { %v209_v37 = vadd.f32 %v208_v36, %v207_v35 }
 0x182   :  { %v210_v38 = vrot.slane %v209_v37, 1 }
 0x184   :  { %v211_v39 = vadd.f32 %v210_v38, %v209_v37 }
 0x186   :  { %277 = vpush %v211_v39 }
 0x1b7   :  { %s278_s3 = spop %277 }
 0x1b8   :  { %s213_s14 = smul.f32 0.00125, %s278_s3 }
 0x1ba   :  { %215 = sst [smem:[#allocation2]] %s213_s14 }
 0x1bb   :  { %292 = shalt.err (!%p289_p2)
}
 0x1bc   :  { %s298_s21 = smov [#allocation2]  }
 0x1bd   :  { %223 = dma.smem_to_hbm %s298_s21, 16, %s385_s5, [#allocation3]  }
 0x1be   :  { %293 = dma.done.wait [#allocation3], 16  }
 0x1bf   :  { %294 = vsyncadd [#allocation3], 4294967280 }
 0x1c0   :  { %227 = sfence }
 0x1c1   :  { %228 = vsyncpa [#allocation3], 1 }

</bundles_post_ra>
